<compile_context>
chip_gen: v7x
topology: tpu7x:2x2x1
jax: 0.10.0
libtpu: 0.0.40
codegen_flags: <defaults>
</compile_context>

<pallas_src>
import functools

import jax
import jax.numpy as jnp
from jax.experimental import pallas as pl
from jax.experimental.pallas import tpu as pltpu

LN_EPS = 1e-5
LANE = 128


def _round_up(n, m):
    return (n + m - 1) // m * m


def grn_kernel(xc_ref, wf_ref, bf_ref, w2_ref, b2_ref,
               wga_ref, bga_ref, wgb_ref, bgb_ref, lnw_ref, lnb_ref,
               o_ref, *, dh_p, d_out):
    # Fused stage 1: [h | residual] = [x|c] @ [[w1, wp], [w3, 0]] + [b1 | bp]
    hr = jnp.dot(xc_ref[...], wf_ref[...],
                 preferred_element_type=jnp.float32) + bf_ref[...]
    h = hr[:, :dh_p]           # split lands on a 128-lane boundary (dh_p % 128 == 0)
    residual = hr[:, dh_p:]

    # ELU (alpha = 1).  Clamp the exp argument so the discarded branch stays finite.
    h = jnp.where(h > 0.0, h, jnp.exp(jnp.minimum(h, 0.0)) - 1.0)

    # fc2 (dropout is identity in eval mode); bf16 into the MXU, f32 accumulate.
    y = jnp.dot(h.astype(jnp.bfloat16), w2_ref[...],
                preferred_element_type=jnp.float32) + b2_ref[...]
    yb = y.astype(jnp.bfloat16)

    # GLU: two lane-aligned matmuls instead of one (Dp, 2*Dp) matmul + mid-lane slice.
    a = jnp.dot(yb, wga_ref[...], preferred_element_type=jnp.float32) + bga_ref[...]
    b = jnp.dot(yb, wgb_ref[...], preferred_element_type=jnp.float32) + bgb_ref[...]
    # sigmoid = 1 / (1 + exp(-b)): exp on the EUP, approx reciprocal keeps the divide
    # off the VPU.
    gate = pl.reciprocal(1.0 + jnp.exp(-b), approx=True)
    z = a * gate + residual                      # padded lanes of z are exactly 0

    # LayerNorm over the true d_out features (weights/biases zero-padded -> padded
    # lanes contribute nothing; output padded lanes end up 0 and are trimmed outside).
    lane_idx = jax.lax.broadcasted_iota(jnp.int32, z.shape, 1)
    feat_mask = lane_idx < d_out
    inv_n = 1.0 / d_out
    mean = jnp.sum(z, axis=-1, keepdims=True) * inv_n
    zc = jnp.where(feat_mask, z - mean, 0.0)
    var = jnp.sum(zc * zc, axis=-1, keepdims=True) * inv_n
    zn = zc * jax.lax.rsqrt(var + LN_EPS)
    o_ref[...] = (zn * lnw_ref[...] + lnb_ref[...]).astype(o_ref.dtype)


def grn_forward(x, context, params, *, tm=512):
    B, S, D_in = x.shape
    D_ctx = context.shape[-1]
    D_hid = params["w1"].shape[1]
    D_out = params["wp"].shape[1]
    M = B * S
    Dk = D_in + D_ctx
    Dh_p = _round_up(D_hid, LANE)
    Dp = _round_up(D_out, LANE)
    f32, bf16 = jnp.float32, jnp.bfloat16

    # Row tile: large & MXU-friendly for big M, shrunk (but kept a multiple of 8) for
    # tiny M so we don't pad 8 rows up to 512.  Ragged M is padded and trimmed.
    tm_eff = min(_round_up(tm, 8), _round_up(M, 8))
    M_pad = _round_up(M, tm_eff)

    # Concatenate x and context once; zero-pad extra rows (numerically benign: padded
    # rows produce constant z -> var=0 -> finite via eps, and are trimmed anyway).
    xc = jnp.concatenate([x.reshape(M, D_in), context.reshape(M, D_ctx)], axis=-1)
    if M_pad != M:
        xc = jnp.pad(xc, ((0, M_pad - M), (0, 0)))
    xc = xc.astype(bf16)

    # Fused stage-1 weight [[w1, wp], [w3, 0]], lane-padded so the h/residual split is
    # 128-lane aligned.  All padding values are zero so padded lanes stay exactly zero.
    wf = jnp.zeros((Dk, Dh_p + Dp), f32)
    wf = wf.at[:D_in, :D_hid].set(params["w1"])
    wf = wf.at[D_in:, :D_hid].set(params["w3"])
    wf = wf.at[:D_in, Dh_p:Dh_p + D_out].set(params["wp"])
    bf = jnp.zeros((1, Dh_p + Dp), f32)
    bf = bf.at[:, :D_hid].set(params["b1"])
    bf = bf.at[:, Dh_p:Dh_p + D_out].set(params["bp"])

    w2 = jnp.zeros((Dh_p, Dp), f32).at[:D_hid, :D_out].set(params["w2"])
    b2 = jnp.zeros((1, Dp), f32).at[:, :D_out].set(params["b2"])
    wga = jnp.zeros((Dp, Dp), f32).at[:D_out, :D_out].set(params["wg"][:, :D_out])
    wgb = jnp.zeros((Dp, Dp), f32).at[:D_out, :D_out].set(params["wg"][:, D_out:])
    bga = jnp.zeros((1, Dp), f32).at[:, :D_out].set(params["bg"][:, :D_out])
    bgb = jnp.zeros((1, Dp), f32).at[:, :D_out].set(params["bg"][:, D_out:])
    lnw = jnp.zeros((1, Dp), f32).at[:, :D_out].set(params["ln_w"])
    lnb = jnp.zeros((1, Dp), f32).at[:, :D_out].set(params["ln_b"])

    wf_b, w2_b, wga_b, wgb_b = (w.astype(bf16) for w in (wf, w2, wga, wgb))

    grid = (M_pad // tm_eff,)

    def full(shape):
        return pl.BlockSpec(shape, lambda i: (0, 0))

    # VMEM budget: double-buffered activation blocks + resident weights + rough live
    # f32 intermediates; bounded by the v7x 64 MiB per-core ceiling.
    act_bytes = tm_eff * (_round_up(Dk, LANE) * 2 + Dp * 4)
    weight_bytes = 2 * (Dk * (Dh_p + Dp) + Dh_p * Dp + 2 * Dp * Dp) \
        + 4 * 6 * (Dh_p + Dp)
    live_bytes = tm_eff * (Dh_p + 6 * Dp) * 4
    vmem_limit = int(min(64 * 2**20,
                         max(16 * 2**20,
                             2 * (2 * act_bytes + weight_bytes + live_bytes))))

    cost = pl.CostEstimate(
        flops=2 * M * (Dk * (D_hid + D_out) + D_hid * D_out + 2 * D_out * D_out),
        transcendentals=M * (D_hid + D_out),
        bytes_accessed=int(xc.size) * 2 + M * D_out * 4
        + (wf.size + w2.size + wga.size + wgb.size) * 2,
    )

    out = pl.pallas_call(
        functools.partial(grn_kernel, dh_p=Dh_p, d_out=D_out),
        out_shape=jax.ShapeDtypeStruct((M_pad, Dp), x.dtype),
        grid_spec=pltpu.PrefetchScalarGridSpec(
            num_scalar_prefetch=0,
            grid=grid,
            in_specs=[
                pl.BlockSpec((tm_eff, Dk), lambda i: (i, 0)),   # [x | context] rows
                full((Dk, Dh_p + Dp)),                          # fused stage-1 weight
                full((1, Dh_p + Dp)),                           # fused stage-1 bias
                full((Dh_p, Dp)),                               # fc2 weight
                full((1, Dp)),                                  # fc2 bias
                full((Dp, Dp)),                                 # GLU weight (value half)
                full((1, Dp)),                                  # GLU bias   (value half)
                full((Dp, Dp)),                                 # GLU weight (gate half)
                full((1, Dp)),                                  # GLU bias   (gate half)
                full((1, Dp)),                                  # LayerNorm weight
                full((1, Dp)),                                  # LayerNorm bias
            ],
            out_specs=pl.BlockSpec((tm_eff, Dp), lambda i: (i, 0)),
        ),
        compiler_params=pltpu.CompilerParams(
            dimension_semantics=("parallel",),
            vmem_limit_bytes=vmem_limit,
        ),
        cost_estimate=cost,
    )(xc, wf_b, bf, w2_b, b2, wga_b, bga, wgb_b, bgb, lnw, lnb)

    return out[:M, :D_out].reshape(B, S, D_out)


def grn_reference(x, context, params):
    xf = x.astype(jnp.float32)
    cf = context.astype(jnp.float32)
    residual = xf @ params["wp"] + params["bp"]
    h = xf @ params["w1"] + params["b1"] + cf @ params["w3"]
    h = jnp.where(h > 0.0, h, jnp.exp(h) - 1.0)
    y = h @ params["w2"] + params["b2"]
    g = y @ params["wg"] + params["bg"]
    d_out = params["wp"].shape[1]
    glu = g[..., :d_out] * jax.nn.sigmoid(g[..., d_out:])
    z = glu + residual
    mean = z.mean(-1, keepdims=True)
    var = ((z - mean) ** 2).mean(-1, keepdims=True)
    return ((z - mean) / jnp.sqrt(var + LN_EPS)) * params["ln_w"] + params["ln_b"]


def make_params(key, d_in, d_hid, d_out, d_ctx):
    ks = jax.random.split(key, 5)
    # Deterministic synthetic init (biases zero, LN weight=1/bias=0, matching the
    # module's initialize_parameters structure; weight values are synthetic).
    return {
        "w1": jax.random.normal(ks[0], (d_in, d_hid), jnp.float32) * (2.0 / d_in) ** 0.5,
        "b1": jnp.zeros((1, d_hid), jnp.float32),
        "w3": jax.random.normal(ks[1], (d_ctx, d_hid), jnp.float32) * (1.0 / d_ctx) ** 0.5,
        "w2": jax.random.normal(ks[2], (d_hid, d_out), jnp.float32) * (2.0 / d_hid) ** 0.5,
        "b2": jnp.zeros((1, d_out), jnp.float32),
        "wp": jax.random.normal(ks[3], (d_in, d_out), jnp.float32) * (1.0 / d_in) ** 0.5,
        "bp": jnp.zeros((1, d_out), jnp.float32),
        "wg": jax.random.normal(ks[4], (d_out, 2 * d_out), jnp.float32) * (1.0 / d_out) ** 0.5,
        "bg": jnp.zeros((1, 2 * d_out), jnp.float32),
        "ln_w": jnp.ones((1, d_out), jnp.float32),
        "ln_b": jnp.zeros((1, d_out), jnp.float32),
    }


if __name__ == "__main__":
    batch, seq = 2, 8
    d_in, d_hid, d_out, d_ctx = 32, 32, 16, 8

    key = jax.random.PRNGKey(0)
    kx, kc, kp = jax.random.split(key, 3)
    x = jax.random.normal(kx, (batch, seq, d_in), jnp.float32)
    context = jax.random.normal(kc, (batch, seq, d_ctx), jnp.float32)
    params = make_params(kp, d_in, d_hid, d_out, d_ctx)

    tol = dict(rtol=5e-2, atol=5e-2)  # bf16 MXU inputs + approx reciprocal

    # 1) default (large) tile -> single grid step at this tiny size
    out = jax.block_until_ready(grn_forward(x, context, params))
    ref = grn_reference(x, context, params)
    assert out.shape == (batch, seq, d_out)
    assert jnp.allclose(out, ref, **tol), "Pallas output mismatch (default tile)"

    # 2) multi-step grid path (tm=8 -> 2 grid steps)
    out2 = jax.block_until_ready(grn_forward(x, context, params, tm=8))
    assert jnp.allclose(out2, ref, **tol), "Pallas output mismatch (tm=8, grid>1)"

    # 3) ragged batch*seq: rows are padded to the tile and trimmed back
    x3, c3 = x[:, :5], context[:, :5]
    out3 = jax.block_until_ready(grn_forward(x3, c3, params))
    ref3 = grn_reference(x3, c3, params)
    assert out3.shape == (batch, 5, d_out)
    assert jnp.allclose(out3, ref3, **tol), "Pallas output mismatch (ragged M)"

    print("KERNEL_OK")
</pallas_src>

<mosaic_0001>
module attributes {stable_mosaic.version = 11 : i64} {
  func.func @grn_kernel(%arg0: i32, %arg1: memref<16x40xbf16, #tpu.memory_space<vmem>>, %arg2: memref<40x256xbf16, #tpu.memory_space<vmem>>, %arg3: memref<1x256xf32, #tpu.memory_space<vmem>>, %arg4: memref<128x128xbf16, #tpu.memory_space<vmem>>, %arg5: memref<1x128xf32, #tpu.memory_space<vmem>>, %arg6: memref<128x128xbf16, #tpu.memory_space<vmem>>, %arg7: memref<1x128xf32, #tpu.memory_space<vmem>>, %arg8: memref<128x128xbf16, #tpu.memory_space<vmem>>, %arg9: memref<1x128xf32, #tpu.memory_space<vmem>>, %arg10: memref<1x128xf32, #tpu.memory_space<vmem>>, %arg11: memref<1x128xf32, #tpu.memory_space<vmem>>, %arg12: memref<16x128xf32, #tpu.memory_space<vmem>>) attributes {dimension_semantics = [#tpu.dimension_semantics<parallel>], iteration_bounds = array<i64: 1>, scalar_prefetch = 0 : i64, scratch_operands = 0 : i64, tpu.core_type = #tpu.core_type<tc>, window_params = [{transform_indices = @transform_0, window_bounds = array<i64: 16, 40>}, {pipeline_mode = #tpu.pipeline_mode<synchronous>, transform_indices = @transform_1, window_bounds = array<i64: 40, 256>}, {pipeline_mode = #tpu.pipeline_mode<synchronous>, transform_indices = @transform_2, window_bounds = array<i64: 1, 256>}, {pipeline_mode = #tpu.pipeline_mode<synchronous>, transform_indices = @transform_3, window_bounds = array<i64: 128, 128>}, {pipeline_mode = #tpu.pipeline_mode<synchronous>, transform_indices = @transform_4, window_bounds = array<i64: 1, 128>}, {pipeline_mode = #tpu.pipeline_mode<synchronous>, transform_indices = @transform_5, window_bounds = array<i64: 128, 128>}, {pipeline_mode = #tpu.pipeline_mode<synchronous>, transform_indices = @transform_6, window_bounds = array<i64: 1, 128>}, {pipeline_mode = #tpu.pipeline_mode<synchronous>, transform_indices = @transform_7, window_bounds = array<i64: 128, 128>}, {pipeline_mode = #tpu.pipeline_mode<synchronous>, transform_indices = @transform_8, window_bounds = array<i64: 1, 128>}, {pipeline_mode = #tpu.pipeline_mode<synchronous>, transform_indices = @transform_9, window_bounds = array<i64: 1, 128>}, {pipeline_mode = #tpu.pipeline_mode<synchronous>, transform_indices = @transform_10, window_bounds = array<i64: 1, 128>}, {transform_indices = @transform_11, window_bounds = array<i64: 16, 128>}]} {
    %c0 = arith.constant 0 : index
    %c0_0 = arith.constant 0 : index
    %0 = vector.load %arg1[%c0, %c0_0] : memref<16x40xbf16, #tpu.memory_space<vmem>>, vector<16x40xbf16>
    %c0_1 = arith.constant 0 : index
    %c0_2 = arith.constant 0 : index
    %1 = vector.load %arg2[%c0_1, %c0_2] : memref<40x256xbf16, #tpu.memory_space<vmem>>, vector<40x256xbf16>
    %cst = arith.constant dense<0.000000e+00> : vector<16x256xf32>
    %2 = tpu.matmul %0, %1, %cst {dimension_numbers = #tpu.dot_dimension_numbers<[1], [0], [0], [1], [0, 0, 1, 1], [], []>} : vector<16x40xbf16>, vector<40x256xbf16>, vector<16x256xf32> -> vector<16x256xf32>
    %c0_3 = arith.constant 0 : index
    %c0_4 = arith.constant 0 : index
    %3 = vector.load %arg3[%c0_3, %c0_4] : memref<1x256xf32, #tpu.memory_space<vmem>>, vector<1x256xf32>
    %4 = vector.broadcast %3 : vector<1x256xf32> to vector<16x256xf32>
    %5 = arith.addf %2, %4 : vector<16x256xf32>
    %6 = vector.extract_strided_slice %5 {offsets = [0, 0], sizes = [16, 128], strides = [1, 1]} : vector<16x256xf32> to vector<16x128xf32>
    %7 = vector.extract_strided_slice %5 {offsets = [0, 128], sizes = [16, 128], strides = [1, 1]} : vector<16x256xf32> to vector<16x128xf32>
    %cst_5 = arith.constant 0.000000e+00 : f32
    %8 = vector.broadcast %cst_5 : f32 to vector<16x128xf32>
    %9 = arith.cmpf ogt, %6, %8 : vector<16x128xf32>
    %cst_6 = arith.constant 0.000000e+00 : f32
    %10 = vector.broadcast %cst_6 : f32 to vector<16x128xf32>
    %11 = arith.minimumf %6, %10 : vector<16x128xf32>
    %12 = math.exp %11 : vector<16x128xf32>
    %cst_7 = arith.constant 1.000000e+00 : f32
    %13 = vector.broadcast %cst_7 : f32 to vector<16x128xf32>
    %14 = arith.subf %12, %13 : vector<16x128xf32>
    %15 = arith.select %9, %6, %14 : vector<16x128xi1>, vector<16x128xf32>
    %16 = arith.truncf %15 : vector<16x128xf32> to vector<16x128xbf16>
    %c0_8 = arith.constant 0 : index
    %c0_9 = arith.constant 0 : index
    %17 = vector.load %arg4[%c0_8, %c0_9] : memref<128x128xbf16, #tpu.memory_space<vmem>>, vector<128x128xbf16>
    %cst_10 = arith.constant dense<0.000000e+00> : vector<16x128xf32>
    %18 = tpu.matmul %16, %17, %cst_10 {dimension_numbers = #tpu.dot_dimension_numbers<[1], [0], [0], [1], [0, 0, 1, 1], [], []>} : vector<16x128xbf16>, vector<128x128xbf16>, vector<16x128xf32> -> vector<16x128xf32>
    %c0_11 = arith.constant 0 : index
    %c0_12 = arith.constant 0 : index
    %19 = vector.load %arg5[%c0_11, %c0_12] : memref<1x128xf32, #tpu.memory_space<vmem>>, vector<1x128xf32>
    %20 = vector.broadcast %19 : vector<1x128xf32> to vector<16x128xf32>
    %21 = arith.addf %18, %20 : vector<16x128xf32>
    %22 = arith.truncf %21 : vector<16x128xf32> to vector<16x128xbf16>
    %c0_13 = arith.constant 0 : index
    %c0_14 = arith.constant 0 : index
    %23 = vector.load %arg6[%c0_13, %c0_14] : memref<128x128xbf16, #tpu.memory_space<vmem>>, vector<128x128xbf16>
    %cst_15 = arith.constant dense<0.000000e+00> : vector<16x128xf32>
    %24 = tpu.matmul %22, %23, %cst_15 {dimension_numbers = #tpu.dot_dimension_numbers<[1], [0], [0], [1], [0, 0, 1, 1], [], []>} : vector<16x128xbf16>, vector<128x128xbf16>, vector<16x128xf32> -> vector<16x128xf32>
    %c0_16 = arith.constant 0 : index
    %c0_17 = arith.constant 0 : index
    %25 = vector.load %arg7[%c0_16, %c0_17] : memref<1x128xf32, #tpu.memory_space<vmem>>, vector<1x128xf32>
    %26 = vector.broadcast %25 : vector<1x128xf32> to vector<16x128xf32>
    %27 = arith.addf %24, %26 : vector<16x128xf32>
    %c0_18 = arith.constant 0 : index
    %c0_19 = arith.constant 0 : index
    %28 = vector.load %arg8[%c0_18, %c0_19] : memref<128x128xbf16, #tpu.memory_space<vmem>>, vector<128x128xbf16>
    %cst_20 = arith.constant dense<0.000000e+00> : vector<16x128xf32>
    %29 = tpu.matmul %22, %28, %cst_20 {dimension_numbers = #tpu.dot_dimension_numbers<[1], [0], [0], [1], [0, 0, 1, 1], [], []>} : vector<16x128xbf16>, vector<128x128xbf16>, vector<16x128xf32> -> vector<16x128xf32>
    %c0_21 = arith.constant 0 : index
    %c0_22 = arith.constant 0 : index
    %30 = vector.load %arg9[%c0_21, %c0_22] : memref<1x128xf32, #tpu.memory_space<vmem>>, vector<1x128xf32>
    %31 = vector.broadcast %30 : vector<1x128xf32> to vector<16x128xf32>
    %32 = arith.addf %29, %31 : vector<16x128xf32>
    %cst_23 = arith.constant 0.000000e+00 : f32
    %33 = vector.broadcast %cst_23 : f32 to vector<16x128xf32>
    %34 = arith.subf %33, %32 : vector<16x128xf32>
    %35 = math.exp %34 : vector<16x128xf32>
    %cst_24 = arith.constant 1.000000e+00 : f32
    %36 = vector.broadcast %cst_24 : f32 to vector<16x128xf32>
    %37 = arith.addf %36, %35 : vector<16x128xf32>
    %38 = tpu.reciprocal %37 {approx = true} : vector<16x128xf32> -> vector<16x128xf32>
    %39 = arith.mulf %27, %38 : vector<16x128xf32>
    %40 = arith.addf %39, %7 : vector<16x128xf32>
    %41 = tpu.iota {dimensions = array<i32: 1>} : vector<16x128xi32>
    %c16_i32 = arith.constant 16 : i32
    %42 = vector.broadcast %c16_i32 : i32 to vector<16x128xi32>
    %43 = arith.cmpi slt, %41, %42 : vector<16x128xi32>
    %cst_25 = arith.constant dense<0.000000e+00> : vector<16xf32>
    %44 = vector.multi_reduction <add>, %40, %cst_25 [1] : vector<16x128xf32> to vector<16xf32>
    %45 = vector.shape_cast %44 : vector<16xf32> to vector<16x1xf32>
    %cst_26 = arith.constant 6.250000e-02 : f32
    %46 = vector.broadcast %cst_26 : f32 to vector<16x1xf32>
    %47 = arith.mulf %45, %46 : vector<16x1xf32>
    %48 = vector.broadcast %47 : vector<16x1xf32> to vector<16x128xf32>
    %49 = arith.subf %40, %48 : vector<16x128xf32>
    %cst_27 = arith.constant 0.000000e+00 : f32
    %50 = vector.broadcast %cst_27 : f32 to vector<16x128xf32>
    %51 = arith.select %43, %49, %50 : vector<16x128xi1>, vector<16x128xf32>
    %52 = arith.mulf %51, %51 : vector<16x128xf32>
    %cst_28 = arith.constant dense<0.000000e+00> : vector<16xf32>
    %53 = vector.multi_reduction <add>, %52, %cst_28 [1] : vector<16x128xf32> to vector<16xf32>
    %54 = vector.shape_cast %53 : vector<16xf32> to vector<16x1xf32>
    %cst_29 = arith.constant 6.250000e-02 : f32
    %55 = vector.broadcast %cst_29 : f32 to vector<16x1xf32>
    %56 = arith.mulf %54, %55 : vector<16x1xf32>
    %cst_30 = arith.constant 9.99999974E-6 : f32
    %57 = vector.broadcast %cst_30 : f32 to vector<16x1xf32>
    %58 = arith.addf %56, %57 : vector<16x1xf32>
    %59 = math.rsqrt %58 : vector<16x1xf32>
    %60 = vector.broadcast %59 : vector<16x1xf32> to vector<16x128xf32>
    %61 = arith.mulf %51, %60 : vector<16x128xf32>
    %c0_31 = arith.constant 0 : index
    %c0_32 = arith.constant 0 : index
    %62 = vector.load %arg10[%c0_31, %c0_32] : memref<1x128xf32, #tpu.memory_space<vmem>>, vector<1x128xf32>
    %63 = vector.broadcast %62 : vector<1x128xf32> to vector<16x128xf32>
    %64 = arith.mulf %61, %63 : vector<16x128xf32>
    %c0_33 = arith.constant 0 : index
    %c0_34 = arith.constant 0 : index
    %65 = vector.load %arg11[%c0_33, %c0_34] : memref<1x128xf32, #tpu.memory_space<vmem>>, vector<1x128xf32>
    %66 = vector.broadcast %65 : vector<1x128xf32> to vector<16x128xf32>
    %67 = arith.addf %64, %66 : vector<16x128xf32>
    %c0_35 = arith.constant 0 : index
    %c0_36 = arith.constant 0 : index
    %68 = vector.load %arg12[%c0_35, %c0_36] : memref<16x128xf32, #tpu.memory_space<vmem>>, vector<16x128xf32>
    tpu.vector_store %arg12[%c0_35, %c0_36], %67 {strides = array<i32>} : memref<16x128xf32, #tpu.memory_space<vmem>>, vector<16x128xf32>,
    return
  }
  func.func @transform_0(%arg0: i32) -> (i32, i32) {
    %c0_i32 = arith.constant 0 : i32
    %c0_i32_0 = arith.constant 0 : i32
    return %arg0, %c0_i32 : i32, i32
  }
  func.func @transform_1(%arg0: i32) -> (i32, i32) {
    %c0_i32 = arith.constant 0 : i32
    %c0_i32_0 = arith.constant 0 : i32
    %c0_i32_1 = arith.constant 0 : i32
    return %c0_i32, %c0_i32_0 : i32, i32
  }
  func.func @transform_2(%arg0: i32) -> (i32, i32) {
    %c0_i32 = arith.constant 0 : i32
    %c0_i32_0 = arith.constant 0 : i32
    %c0_i32_1 = arith.constant 0 : i32
    return %c0_i32, %c0_i32_0 : i32, i32
  }
  func.func @transform_3(%arg0: i32) -> (i32, i32) {
    %c0_i32 = arith.constant 0 : i32
    %c0_i32_0 = arith.constant 0 : i32
    %c0_i32_1 = arith.constant 0 : i32
    return %c0_i32, %c0_i32_0 : i32, i32
  }
  func.func @transform_4(%arg0: i32) -> (i32, i32) {
    %c0_i32 = arith.constant 0 : i32
    %c0_i32_0 = arith.constant 0 : i32
    %c0_i32_1 = arith.constant 0 : i32
    return %c0_i32, %c0_i32_0 : i32, i32
  }
  func.func @transform_5(%arg0: i32) -> (i32, i32) {
    %c0_i32 = arith.constant 0 : i32
    %c0_i32_0 = arith.constant 0 : i32
    %c0_i32_1 = arith.constant 0 : i32
    return %c0_i32, %c0_i32_0 : i32, i32
  }
  func.func @transform_6(%arg0: i32) -> (i32, i32) {
    %c0_i32 = arith.constant 0 : i32
    %c0_i32_0 = arith.constant 0 : i32
    %c0_i32_1 = arith.constant 0 : i32
    return %c0_i32, %c0_i32_0 : i32, i32
  }
  func.func @transform_7(%arg0: i32) -> (i32, i32) {
    %c0_i32 = arith.constant 0 : i32
    %c0_i32_0 = arith.constant 0 : i32
    %c0_i32_1 = arith.constant 0 : i32
    return %c0_i32, %c0_i32_0 : i32, i32
  }
  func.func @transform_8(%arg0: i32) -> (i32, i32) {
    %c0_i32 = arith.constant 0 : i32
    %c0_i32_0 = arith.constant 0 : i32
    %c0_i32_1 = arith.constant 0 : i32
    return %c0_i32, %c0_i32_0 : i32, i32
  }
  func.func @transform_9(%arg0: i32) -> (i32, i32) {
    %c0_i32 = arith.constant 0 : i32
    %c0_i32_0 = arith.constant 0 : i32
    %c0_i32_1 = arith.constant 0 : i32
    return %c0_i32, %c0_i32_0 : i32, i32
  }
  func.func @transform_10(%arg0: i32) -> (i32, i32) {
    %c0_i32 = arith.constant 0 : i32
    %c0_i32_0 = arith.constant 0 : i32
    %c0_i32_1 = arith.constant 0 : i32
    return %c0_i32, %c0_i32_0 : i32, i32
  }
  func.func @transform_11(%arg0: i32) -> (i32, i32) {
    %c0_i32 = arith.constant 0 : i32
    %c0_i32_0 = arith.constant 0 : i32
    return %arg0, %c0_i32 : i32, i32
  }
}

</mosaic_0001>

<bundles_post_ra>
// kernel: tpu_custom_call.1
= control target key start
LH: loop header
LB: loop body
LE: loop exit
PB: predicated region body
PF: predicated region fallthrough
CT: control target
= control target key end

     0   :  { %16 = vsyncpa [#allocation3], 0  ;;  %s1197_s0 = inlined_call_operand.hbm [shape: bf16[16,40], index: 0, kind: input, shape index: {}]   ;;  %s1198_s1 = inlined_call_operand.hbm [shape: bf16[40,256], index: 1, kind: input, shape index: {}]   ;;  %s1199_s2 = inlined_call_operand.vmem [shape: f32[1,256], index: 2, kind: input, shape index: {}]   ;;  %s1200_s3 = inlined_call_operand.hbm [shape: bf16[128,128], index: 3, kind: input, shape index: {}]   ;;  %s1201_s4 = inlined_call_operand.vmem [shape: f32[1,128], index: 4, kind: input, shape index: {}]   ;;  %s1202_s5 = inlined_call_operand.hbm [shape: bf16[128,128], index: 5, kind: input, shape index: {}]   ;;  %s1203_s6 = inlined_call_operand.vmem [shape: f32[1,128], index: 6, kind: input, shape index: {}]   ;;  %s1204_s7 = inlined_call_operand.hbm [shape: bf16[128,128], index: 7, kind: input, shape index: {}]   ;;  %s1205_s8 = inlined_call_operand.vmem [shape: f32[1,128], index: 8, kind: input, shape index: {}]   ;;  %s1206_s9 = inlined_call_operand.vmem [shape: f32[1,128], index: 9, kind: input, shape index: {}]   ;;  %s1207_s10 = inlined_call_operand.vmem [shape: f32[1,128], index: 10, kind: input, shape index: {}]   ;;  %s1208_s11 = inlined_call_operand.hbm [shape: f32[16,128], index: 11, kind: output, shape index: {}]  }
   0x1   :  { %17 = vsyncpa [#allocation6], 0 }
   0x2   :  { %18 = vsyncpa [#allocation9], 0 }
   0x3   :  { %19 = vsyncpa [#allocation4], 0  ;;  %s970_s17 = smov [#allocation5]   ;;  %s830_s21 = scalar_lea.hbm %s1198_s1, 640 }
   0x4   :  { %s37_s18 = sshll.u32 %s970_s17, 4  ;;  %p831_p0 = scmp.ne.s32.totalorder %s1198_s1, %s830_s21  ;;  %s38_s18 = int_to_ptr.vmem [resolvable:$true] %s37_s18 }
   0x5   :  { %p834_p1 = scmp.lt.u32.totalorder %s830_s21, %s1198_s1 }
   0x7   :  { %p836_p2 = pnand %p834_p1, %p831_p0 }
   0x9   :  { %839 = shalt.err (!%p836_p2)
}
   0xa   :  { %s840_s26 = scalar_lea.vmem %s38_s18, 640  ;;  %p845_p4 = scmp.lt.s32.totalorder %s38_s18, %s38_s18 }
   0xb   :  { %p841_p3 = scmp.ne.s32.totalorder %s38_s18, %s840_s26  ;;  %p846_p5 = scmp.lt.s32.totalorder %s840_s26, %s840_s26 }
   0xd   :  { %p847_p6 = por %p846_p5, %p845_p4 }
   0xf   :  { %p848_p7 = pnand %p847_p6, %p841_p3 }
  0x11   :  { %851 = shalt.err (!%p848_p7)
}
  0x12   :  { %s971_s27 = smov 128   ;;  %s972_s28 = smov 8  }
  0x13   :  { %43 = dma.hbm_to_vmem [thread:$0]  %s1198_s1, 640, %s38_s18, [#allocation6], %s971_s27, %s971_s27, %s972_s28  }
  0x14   :  { %s973_s12 = smov [#allocation8]   ;;  %s974_s14 = smov [#allocation2]  }
  0x15   :  { %s65_s13 = sshll.u32 %s973_s12, 4  ;;  %s25_s15 = sshll.u32 %s974_s14, 4  ;;  %s66_s13 = int_to_ptr.vmem [resolvable:$true] %s65_s13  ;;  %s26_s15 = int_to_ptr.vmem [resolvable:$true] %s25_s15 }
  0x16   :  { %s852_s19 = scalar_lea.hbm %s1202_s5, 1024 }
  0x17   :  { %p853_p8 = scmp.ne.s32.totalorder %s1202_s5, %s852_s19  ;;  %p856_p9 = scmp.lt.u32.totalorder %s852_s19, %s1202_s5 }
  0x19   :  { %p858_p10 = pnand %p856_p9, %p853_p8 }
  0x1b   :  { %861 = shalt.err (!%p858_p10)
}
  0x1c   :  { %s862_s1 = scalar_lea.vmem %s66_s13, 1024  ;;  %p867_p12 = scmp.lt.s32.totalorder %s66_s13, %s66_s13 }
  0x1d   :  { %p863_p11 = scmp.ne.s32.totalorder %s66_s13, %s862_s1  ;;  %p868_p13 = scmp.lt.s32.totalorder %s862_s1, %s862_s1 }
  0x1f   :  { %p869_p0 = por %p868_p13, %p867_p12 }
  0x21   :  { %p870_p1 = pnand %p869_p0, %p863_p11 }
  0x23   :  { %873 = shalt.err (!%p870_p1)
}
  0x24   :  { %s975_s18 = smov 64   ;;  %s976_s24 = smov 4  }
  0x25   :  { %71 = dma.hbm_to_vmem [thread:$0]  %s1202_s5, 1024, %s66_s13, [#allocation9], %s975_s18, %s975_s18, %s976_s24  }
  0x26   :  { %s874_s12 = scalar_lea.hbm %s1197_s0, 128 }
  0x27   :  { %p875_p2 = scmp.ne.s32.totalorder %s1197_s0, %s874_s12  ;;  %p878_p3 = scmp.lt.u32.totalorder %s874_s12, %s1197_s0 }
  0x29   :  { %p880_p4 = pnand %p878_p3, %p875_p2 }
  0x2b   :  { %883 = shalt.err (!%p880_p4)
}
  0x2c   :  { %s884_s20 = scalar_lea.vmem %s26_s15, 128  ;;  %p889_p6 = scmp.lt.s32.totalorder %s26_s15, %s26_s15 }
  0x2d   :  { %p885_p5 = scmp.ne.s32.totalorder %s26_s15, %s884_s20  ;;  %p890_p7 = scmp.lt.s32.totalorder %s884_s20, %s884_s20 }
  0x2f   :  { %p891_p8 = por %p890_p7, %p889_p6 }
  0x31   :  { %p892_p9 = pnand %p891_p8, %p885_p5 }
  0x33   :  { %895 = shalt.err (!%p892_p9)
}
  0x34   :  { %31 = dma.hbm_to_vmem [thread:$0]  %s1197_s0, 128, %s26_s15, [#allocation3], %s975_s18, %s975_s18, %s976_s24  }
  0x35   :  { %s977_s21 = smov [#allocation7]   ;;  %s978_s23 = smov [#allocation10]  }
  0x36   :  { %s51_s22 = sshll.u32 %s977_s21, 4  ;;  %s79_s1 = sshll.u32 %s978_s23, 4  ;;  %s52_s22 = int_to_ptr.vmem [resolvable:$true] %s51_s22  ;;  %s80_s1 = int_to_ptr.vmem [resolvable:$true] %s79_s1 }
  0x37   :  { %s896_s29 = scalar_lea.hbm %s1200_s3, 1024 }
  0x38   :  { %p897_p10 = scmp.ne.s32.totalorder %s1200_s3, %s896_s29  ;;  %p900_p11 = scmp.lt.u32.totalorder %s896_s29, %s1200_s3 }
  0x3a   :  { %p902_p12 = pnand %p900_p11, %p897_p10 }
  0x3c   :  { %905 = shalt.err (!%p902_p12)
}
  0x3d   :  { %s906_s0 = scalar_lea.vmem %s52_s22, 1024  ;;  %p911_p0 = scmp.lt.s32.totalorder %s52_s22, %s52_s22 }
  0x3e   :  { %p907_p13 = scmp.ne.s32.totalorder %s52_s22, %s906_s0  ;;  %p912_p1 = scmp.lt.s32.totalorder %s906_s0, %s906_s0 }
  0x40   :  { %p913_p2 = por %p912_p1, %p911_p0 }
  0x42   :  { %p914_p3 = pnand %p913_p2, %p907_p13 }
  0x44   :  { %917 = shalt.err (!%p914_p3)
}
  0x45   :  { %57 = dma.hbm_to_vmem [thread:$0]  %s1200_s3, 1024, %s52_s22, [#allocation6], %s975_s18, %s975_s18, %s976_s24  }
  0x46   :  { %s918_s5 = scalar_lea.hbm %s1204_s7, 1024 }
  0x47   :  { %p919_p4 = scmp.ne.s32.totalorder %s1204_s7, %s918_s5  ;;  %p922_p5 = scmp.lt.u32.totalorder %s918_s5, %s1204_s7 }
  0x49   :  { %p924_p6 = pnand %p922_p5, %p919_p4 }
  0x4b   :  { %927 = shalt.err (!%p924_p6)
}
  0x4c   :  { %s928_s26 = scalar_lea.vmem %s80_s1, 1024  ;;  %p933_p8 = scmp.lt.s32.totalorder %s80_s1, %s80_s1 }
  0x4d   :  { %p929_p7 = scmp.ne.s32.totalorder %s80_s1, %s928_s26  ;;  %p934_p9 = scmp.lt.s32.totalorder %s928_s26, %s928_s26 }
  0x4f   :  { %p935_p10 = por %p934_p9, %p933_p8 }
  0x51   :  { %p936_p11 = pnand %p935_p10, %p929_p7 }
  0x53   :  { %939 = shalt.err (!%p936_p11)
}
  0x54   :  { %85 = dma.hbm_to_vmem [thread:$0]  %s1204_s7, 1024, %s80_s1, [#allocation9], %s975_s18, %s975_s18, %s976_s24  }
  0x55   :  { %962 = dma.done.wait [#allocation3], 128  }
  0x56   :  { %963 = vsyncadd [#allocation3], 4294967168 }
  0x57   :  { %964 = dma.done.wait [#allocation6], 1664  }
  0x58   :  { %965 = vsyncadd [#allocation6], 4294965632 }
  0x59   :  { %966 = dma.done.wait [#allocation9], 2048  }
  0x5a   :  { %967 = vsyncadd [#allocation9], 4294965248  ;;  %v979_v0 = vmov 0   ;;  %v980_v1 = vmov 0.0   ;;  %v781_v2 = vld [vmem:[#allocation5 + $0x4] ss:$8 sps:$4 sm:$0xff]   ;;  %v117_v25 = vlaneseq }
  0x5b   :  { %200 = vmatprep.mubr.bf16.mxu0 %v979_v0  ;;  %708 = vmatprep.subr.bf16.mxu1 %v980_v1  ;;  %v783_v3 = vld [vmem:[#allocation5] ss:$8 sps:$4 sm:$0xff]   ;;  %v784_v4 = vld [vmem:[#allocation5 + $0x14] ss:$8 sps:$4 sm:$0xff]   ;;  %vm161_vm0 = vcmask 1043456   ;;  %vm157_vm1 = vcmask 326656  }
  0x5c   :  { %168 = vmatprep.subr.bf16.mxu0 %v781_v2  ;;  %v114_v5 = vld [vmem:[#allocation5 + $0x20] sm:$0xff]  ;;  %v786_v6 = vld [vmem:[#allocation5 + $0x10] ss:$8 sps:$4 sm:$0xff]   ;;  %v790_v9 = vld [vmem:[#allocation7] sm:$0xff]   ;;  %vm981_vm2 = vmmov 0   ;;  %v1139_v26 = vshrl.u32 %v117_v25, 7 }
  0x5d   :  { %169 = vmatpush1.bf16.msra.mxu0 %v783_v3  ;;  %v646_v7 = vcombine.low %v114_v5, %v114_v5  ;;  %v647_v8 = vcombine.high %v114_v5, %v114_v5  ;;  %709 = vmatpush3.bf16.msra.mxu1 %v790_v9  ;;  %v791_v11 = vld [vmem:[#allocation7 + $0x8] sm:$0xff]   ;;  %v789_v12 = vld [vmem:[#allocation2] sm:$0xff]   ;;  %v793_v14 = vld [vmem:[#allocation7 + $0x18] sm:$0xff]   ;;  %s982_s16 = smov [#allocation11]  }
  0x5e   :  { %170 = vmatprep.subr.bf16.mxu0 %v784_v4  ;;  %710 = vmatprep.subr.bf16.mxu1 %v980_v1  ;;  %v792_v13 = vld [vmem:[#allocation7 + $0x10] sm:$0xff]   ;;  %v794_v15 = vld [vmem:[#allocation7 + $0x20] sm:$0xff]   ;;  %v795_v16 = vld [vmem:[#allocation7 + $0x28] sm:$0xff]   ;;  %v119_v27 = vsub.s32 0, %v1139_v26  ;;  %s627_s0 = sshll.u32 %s982_s16, 4  ;;  %s628_s0 = int_to_ptr.vmem [resolvable:$true] %s627_s0 }
  0x5f   :  { %v163_v10 = vsel %vm161_vm0, %v646_v7, 0  ;;  %v796_v17 = vld [vmem:[#allocation7 + $0x30] sm:$0xff]   ;;  %v797_v18 = vld [vmem:[#allocation7 + $0x38] sm:$0xff]   ;;  %724 = vmatprep.mubr.msk.bf16.mxu1 %vm981_vm2, %v980_v1  ;;  %v798_v19 = vld [vmem:[#allocation8] sm:$0xff]   ;;  %s940_s15 = scalar_lea.vmem %s628_s0, 256  ;;  %p945_p13 = scmp.lt.s32.totalorder %s628_s0, %s628_s0 }
  0x60   :  { %v800_v20 = vld [vmem:[#allocation8 + $0x8] sm:$0xff]   ;;  %v802_v21 = vld [vmem:[#allocation8 + $0x10] sm:$0xff]   ;;  %v804_v22 = vld [vmem:[#allocation8 + $0x18] sm:$0xff]   ;;  %p941_p12 = scmp.ne.s32.totalorder %s628_s0, %s940_s15  ;;  %p946_p0 = scmp.lt.s32.totalorder %s940_s15, %s940_s15 }
  0x61   :  { %171 = vmatpush1.bf16.msra.mxu0 %v786_v6  ;;  %711 = vmatpush3.bf16.msra.mxu1 %v791_v11  ;;  %v806_v23 = vld [vmem:[#allocation8 + $0x20] sm:$0xff]   ;;  %v808_v24 = vld [vmem:[#allocation8 + $0x28] sm:$0xff]   ;;  %v1145_v28 = vld [vmem:[%s1199_s2] sm:$0x3] }
  0x62   :  { %648 = vmatprep.subr.msk.bf16.mxu0 %vm161_vm0, %v647_v8  ;;  %712 = vmatprep.subr.bf16.mxu1 %v980_v1  ;;  %v120_v29 = vrot.slane %v1145_v28, %v119_v27  ;;  %v799_v46 = vld [vmem:[#allocation10] sm:$0xff]   ;;  %v801_v48 = vld [vmem:[#allocation10 + $0x8] sm:$0xff]   ;;  %v803_v49 = vld [vmem:[#allocation10 + $0x10] sm:$0xff]   ;;  %p947_p1 = por %p946_p0, %p945_p13 }
  0x63   :  { %v805_v50 = vld [vmem:[#allocation10 + $0x18] sm:$0xff]   ;;  %v807_v51 = vld [vmem:[#allocation10 + $0x20] sm:$0xff]   ;;  %v809_v52 = vld [vmem:[#allocation10 + $0x28] sm:$0xff]  }
  0x64   :  { %v810_v53 = vld [vmem:[#allocation8 + $0x30] sm:$0xff]   ;;  %v812_v55 = vld [vmem:[#allocation8 + $0x38] sm:$0xff]   ;;  %p948_p2 = pnand %p947_p1, %p941_p12 }
  0x65   :  { %173 = vmatpush1.bf16.msra.mxu0 %v163_v10  ;;  %713 = vmatpush3.bf16.msra.mxu1 %v792_v13  ;;  %v811_v54 = vld [vmem:[#allocation10 + $0x30] sm:$0xff]   ;;  %v813_v56 = vld [vmem:[#allocation10 + $0x38] sm:$0xff]  }
  0x66   :  { %728 = vmatprep.subr.bf16.mxu0 %v980_v1  ;;  %714 = vmatprep.subr.bf16.mxu1 %v980_v1  ;;  %v652_v57 = vld [vmem:[%s1201_s4] ss:$0 sm:$0xff] }
  0x68   :  { %649 = vmatmul.mubr.msk.bf16.vlgmr.msra.gmra.mrb[0].mxu0 %vm157_vm1, %v789_v12 }
  0x69   :  { %715 = vmatpush3.bf16.msra.mxu1 %v793_v14  ;;  %744 = vmatprep.mubr.msk.bf16.mxu0 %vm981_vm2, %v980_v1 }
  0x6a   :  { %716 = vmatprep.subr.bf16.mxu1 %v980_v1  ;;  %729 = vmatpush3.bf16.msra.mxu0 %v798_v19 }
  0x6b   :  { %730 = vmatprep.subr.bf16.mxu0 %v980_v1 }
  0x6d   :  { %717 = vmatpush3.bf16.msra.mxu1 %v794_v15 }
  0x6e   :  { %718 = vmatprep.subr.bf16.mxu1 %v980_v1  ;;  %731 = vmatpush3.bf16.msra.mxu0 %v800_v20  ;;  %v123_v20 = vsub.s32 1, %v1139_v26  ;;  %v576_v26 = vand.u32 127, %v117_v25 }
  0x6f   :  { %732 = vmatprep.subr.bf16.mxu0 %v980_v1 }
  0x70   :  { %vm577_vm5 = vcmp.lt.s32.totalorder %v576_v26, 16 }
  0x71   :  { %719 = vmatpush3.bf16.msra.mxu1 %v795_v16 }
  0x72   :  { %720 = vmatprep.subr.bf16.mxu1 %v980_v1  ;;  %733 = vmatpush3.bf16.msra.mxu0 %v802_v21  ;;  %v661_v21 = vld [vmem:[%s1203_s6] ss:$0 sm:$0xff] }
  0x73   :  { %734 = vmatprep.subr.bf16.mxu0 %v980_v1 }
  0x75   :  { %721 = vmatpush3.bf16.msra.mxu1 %v796_v17 }
  0x76   :  { %722 = vmatprep.subr.bf16.mxu1 %v980_v1  ;;  %735 = vmatpush3.bf16.msra.mxu0 %v804_v22  ;;  %v124_v22 = vrot.slane %v1145_v28, %v123_v20 }
  0x77   :  { %736 = vmatprep.subr.bf16.mxu0 %v980_v1 }
  0x79   :  { %723 = vmatpush3.bf16.msra.mxu1 %v797_v18 }
  0x7a   :  { %748 = vmatprep.subr.bf16.mxu1 %v980_v1  ;;  %737 = vmatpush3.bf16.msra.mxu0 %v806_v23 }
  0x7b   :  { %738 = vmatprep.subr.bf16.mxu0 %v980_v1 }
  0x7e   :  { %739 = vmatpush3.bf16.msra.mxu0 %v808_v24 }
  0x7f   :  { %740 = vmatprep.subr.bf16.mxu0 %v980_v1 }
  0x82   :  { %741 = vmatpush3.bf16.msra.mxu0 %v810_v53  ;;  %v680_v53 = vld [vmem:[%s1207_s10] ss:$0 sm:$0xff] }
  0x83   :  { %742 = vmatprep.subr.bf16.mxu0 %v980_v1 }
  0x86   :  { %743 = vmatpush3.bf16.msra.mxu0 %v812_v55 }
 0x13b   :  { %v202_v30 = vpop.f32.mrb[0].mxu0 }
 0x13c   :  { %v203_v31 = vadd.f32 %v202_v30, %v120_v29  ;;  %v1148_v32 = vpop.f32.mrb[1].mxu0 }
 0x13d   :  { %v206_v33 = vpop.f32.mrb[2].mxu0  ;;  %v205_v27 = vadd.f32 %v1148_v32, %v124_v22 }
 0x13e   :  { %v213_v34 = vmin.f32 %v203_v31, 0.0  ;;  %v207_v35 = vadd.f32 %v206_v33, %v120_v29  ;;  %v1150_v36 = vpop.f32.mrb[3].mxu0  ;;  %vm211_vm3 = vcmp.gt.f32.partialorder %v203_v31, 0.0 }
 0x13f   :  { %v209_v33 = vadd.f32 %v1150_v36, %v124_v22 }
 0x140   :  { %v215_v37 = vmul.f32 1.442695, %v213_v34  ;;  %v214_v38 = vmin.f32 %v207_v35, 0.0  ;;  %vm212_vm4 = vcmp.gt.f32.partialorder %v207_v35, 0.0 }
 0x142   :  { %814 = vpow2.f32 %v215_v37  ;;  %v217_v39 = vmul.f32 1.442695, %v214_v38 }
 0x144   :  { %816 = vpow2.f32 %v217_v39 }
 0x14c   :  { %v815_v40 = vpop.eup %814 }
 0x14d   :  { %v650_v41 = vadd.f32 -1.0, %v815_v40 }
 0x14e   :  { %v817_v42 = vpop.eup %816 }
 0x14f   :  { %v651_v43 = vadd.f32 -1.0, %v817_v42  ;;  %v221_v44 = vsel %vm211_vm3, %v203_v31, %v650_v41 }
 0x151   :  { %v222_v45 = vsel %vm212_vm4, %v207_v35, %v651_v43 }
 0x152   :  { %v223_v47 = vpack.c.bf16 %v222_v45, %v221_v44 }
 0x154   :  { %725 = vmatmul.mubr.bf16.vlgmr.msra.gmra.mrb[0].mxu1 %v223_v47 }
 0x155   :  { %749 = vmatpush3.bf16.msra.mxu1 %v799_v46  ;;  %764 = vmatprep.mubr.msk.bf16.mxu1 %vm981_vm2, %v980_v1 }
 0x156   :  { %750 = vmatprep.subr.bf16.mxu1 %v980_v1 }
 0x159   :  { %751 = vmatpush3.bf16.msra.mxu1 %v801_v48 }
 0x15a   :  { %752 = vmatprep.subr.bf16.mxu1 %v980_v1 }
 0x15d   :  { %753 = vmatpush3.bf16.msra.mxu1 %v803_v49 }
 0x15e   :  { %754 = vmatprep.subr.bf16.mxu1 %v980_v1 }
 0x161   :  { %755 = vmatpush3.bf16.msra.mxu1 %v805_v50 }
 0x162   :  { %756 = vmatprep.subr.bf16.mxu1 %v980_v1 }
 0x165   :  { %757 = vmatpush3.bf16.msra.mxu1 %v807_v51  ;;  %v679_v51 = vld [vmem:[%s1206_s9] ss:$0 sm:$0xff] }
 0x166   :  { %758 = vmatprep.subr.bf16.mxu1 %v980_v1 }
 0x169   :  { %759 = vmatpush3.bf16.msra.mxu1 %v809_v52 }
 0x16a   :  { %760 = vmatprep.subr.bf16.mxu1 %v980_v1 }
 0x16d   :  { %761 = vmatpush3.bf16.msra.mxu1 %v811_v54 }
 0x16e   :  { %762 = vmatprep.subr.bf16.mxu1 %v980_v1  ;;  %v670_v1 = vld [vmem:[%s1205_s8] ss:$0 sm:$0xff] }
 0x171   :  { %763 = vmatpush3.bf16.msra.mxu1 %v813_v56 }
 0x227   :  { %v329_v58 = vpop.f32.mrb[0].mxu1 }
 0x228   :  { %v726_v59 = vpop.f32.mrb[1].mxu1  ;;  %v330_v61 = vadd.f32 %v652_v57, %v329_v58 }
 0x229   :  { %v332_v60 = vpop.f32.mrb[2].mxu1 }
 0x22a   :  { %v333_v62 = vadd.f32 %v652_v57, %v332_v60  ;;  %v727_v63 = vpop.f32.mrb[3].mxu1 }
 0x22c   :  { %v336_v0 = vpack.c.bf16 %v333_v62, %v330_v61 }
 0x22e   :  { %745 = vmatmul.mubr.bf16.vlgmr.msra.gmra.mrb[4].mxu0 %v336_v0  ;;  %765 = vmatmul.mubr.bf16.vlgmr.msra.gmra.mrb[4].mxu1 %v336_v0 }
 0x301   :  { %v442_v2 = vpop.f32.mrb[4].mxu0  ;;  %v554_v3 = vpop.f32.mrb[4].mxu1 }
 0x302   :  { %v555_v4 = vadd.f32 %v670_v1, %v554_v3  ;;  %v746_v5 = vpop.f32.mrb[5].mxu0  ;;  %v766_v6 = vpop.f32.mrb[5].mxu1  ;;  %v443_v23 = vadd.f32 %v661_v21, %v442_v2 }
 0x303   :  { %v445_v7 = vpop.f32.mrb[6].mxu0  ;;  %v557_v8 = vpop.f32.mrb[6].mxu1 }
 0x304   :  { %v561_v9 = vsub.f32 0.0, %v555_v4  ;;  %v558_v10 = vadd.f32 %v670_v1, %v557_v8  ;;  %v747_v11 = vpop.f32.mrb[7].mxu0  ;;  %v767_v12 = vpop.f32.mrb[7].mxu1  ;;  %v446_v29 = vadd.f32 %v661_v21, %v445_v7 }
 0x306   :  { %v563_v13 = vmul.f32 1.442695, %v561_v9  ;;  %v562_v14 = vsub.f32 0.0, %v558_v10 }
 0x308   :  { %818 = vpow2.f32 %v563_v13  ;;  %v565_v15 = vmul.f32 1.442695, %v562_v14 }
 0x30a   :  { %820 = vpow2.f32 %v565_v15 }
 0x312   :  { %v819_v16 = vpop.eup %818 }
 0x313   :  { %v567_v17 = vadd.f32 1.0, %v819_v16 }
 0x314   :  { %v821_v18 = vpop.eup %820 }
 0x315   :  { %822 = vrcp.f32 %v567_v17  ;;  %v568_v19 = vadd.f32 1.0, %v821_v18 }
 0x317   :  { %824 = vrcp.f32 %v568_v19 }
 0x31f   :  { %v823_v24 = vpop.eup %822 }
 0x320   :  { %v571_v30 = vmul.f32 %v823_v24, %v443_v23 }
 0x321   :  { %v825_v31 = vpop.eup %824 }
 0x322   :  { %v573_v34 = vadd.f32 %v571_v30, %v205_v27  ;;  %v572_v35 = vmul.f32 %v825_v31, %v446_v29 }
 0x324   :  { %578 = vadd.xlane.f32.xlu0 %v573_v34  ;;  %v574_v37 = vadd.f32 %v572_v35, %v209_v33 }
 0x328   :  { %580 = vadd.xlane.f32.xlu0 %v574_v37 }
 0x3b1   :  { %v579_v38 = vpop.xlane.xlu0 %578 }
 0x3b2   :  { %v582_v39 = vmul.f32 0.0625, %v579_v38 }
 0x3b4   :  { %v584_v28 = vsub.f32 %v573_v34, %v582_v39 }
 0x3b5   :  { %v581_v40 = vpop.xlane.xlu0 %580 }
 0x3b6   :  { %v583_v41 = vmul.f32 0.0625, %v581_v40  ;;  %v586_v42 = vsel %vm577_vm5, %v584_v28, 0.0 }
 0x3b7   :  { %v588_v32 = vmul.f32 %v586_v42, %v586_v42 }
 0x3b8   :  { %v585_v43 = vsub.f32 %v574_v37, %v583_v41 }
 0x3b9   :  { %590 = vadd.xlane.f32.xlu1 %v588_v32 }
 0x3ba   :  { %v587_v44 = vsel %vm577_vm5, %v585_v43, 0.0 }
 0x3bb   :  { %v589_v45 = vmul.f32 %v587_v44, %v587_v44 }
 0x3bd   :  { %592 = vadd.xlane.f32.xlu1 %v589_v45 }
 0x446   :  { %v591_v36 = vpop.xlane.xlu1 %590 }
 0x447   :  { %v594_v46 = vmul.f32 0.0625, %v591_v36 }
 0x449   :  { %v596_v47 = vadd.f32 1e-05, %v594_v46 }
 0x44a   :  { %v593_v48 = vpop.xlane.xlu1 %592 }
 0x44b   :  { %826 = vrsqrt.f32 %v596_v47  ;;  %v595_v49 = vmul.f32 0.0625, %v593_v48 }
 0x44d   :  { %v597_v25 = vadd.f32 1e-05, %v595_v49 }
 0x44f   :  { %828 = vrsqrt.f32 %v597_v25 }
 0x455   :  { %v827_v50 = vpop.eup %826 }
 0x456   :  { %v600_v52 = vmul.f32 %v827_v50, %v586_v42 }
 0x458   :  { %v609_v54 = vmul.f32 %v679_v51, %v600_v52 }
 0x459   :  { %v829_v55 = vpop.eup %828 }
 0x45a   :  { %v601_v56 = vmul.f32 %v829_v55, %v587_v44  ;;  %v618_v57 = vadd.f32 %v680_v53, %v609_v54 }
 0x45c   :  { %v610_v58 = vmul.f32 %v679_v51, %v601_v56  ;;  %620 = vst [vmem:[#allocation11] sm:$0xff] %v618_v57 }
 0x45e   :  { %v619_v59 = vadd.f32 %v680_v53, %v610_v58 }
 0x460   :  { %621 = vst [vmem:[#allocation11 + $0x8] sm:$0xff] %v619_v59 }
 0x461   :  { %951 = shalt.err (!%p948_p2)
}
 0x462   :  { %s952_s17 = scalar_lea.hbm %s1208_s11, 256 }
 0x463   :  { %p953_p3 = scmp.ne.s32.totalorder %s1208_s11, %s952_s17  ;;  %p956_p4 = scmp.lt.u32.totalorder %s952_s17, %s1208_s11 }
 0x465   :  { %p958_p5 = pnand %p956_p4, %p953_p3 }
 0x467   :  { %961 = shalt.err (!%p958_p5)
}
 0x468   :  { %633 = dma.vmem_to_hbm [thread:$0]  %s628_s0, 256, %s1208_s11, [#allocation4], %s971_s27, %s971_s27, %s972_s28  }
 0x469   :  { %968 = dma.done.wait [#allocation4], 256  }
 0x46a   :  { %969 = vsyncadd [#allocation4], 4294967040 }
 0x46b   :  { %637 = vsyncpa [#allocation3], 1 }
 0x46c   :  { %638 = vsyncpa [#allocation6], 1 }
 0x46d   :  { %639 = vsyncpa [#allocation9], 1 }
 0x46e   :  { %640 = vsyncpa [#allocation4], 1 }

</bundles_post_ra>
